<compile_context>
chip_gen: v7x
topology: tpu7x:2x2x1
jax: 0.10.0
libtpu: 0.0.40
codegen_flags: <defaults>
</compile_context>

<pallas_src>
import functools

import jax
import jax.numpy as jnp
from jax.experimental import pallas as pl
from jax.experimental.pallas import tpu as pltpu

_BN_EPS = 1e-5


def _round_up(v, m):
    return ((v + m - 1) // m) * m


def _spec(shape, index_map, *, single_buffered=False):
    """BlockSpec helper; single_buffered marks grid-constant blocks (halves their VMEM)."""
    if single_buffered:
        try:
            return pl.BlockSpec(shape, index_map, pipeline_mode=pl.Buffered(1))
        except (TypeError, AttributeError):  # older jax without pipeline_mode / Buffered
            return pl.BlockSpec(shape, index_map)
    return pl.BlockSpec(shape, index_map)


def _vmem_limit_bytes():
    """Generation-aware VMEM cap (v5e/v6e: 128 MiB physical, v7x: 64 MiB)."""
    cap = 64 * 1024 * 1024  # conservative default (v7x)
    try:
        info = pltpu.get_tpu_info()
        cap = int(getattr(info, "vmem_capacity_bytes", cap) or cap)
    except Exception:
        pass
    return max(16 * 1024 * 1024, min((cap * 3) // 4, 100 * 1024 * 1024))


# --------------------------- phase 1: fc1 + per-tile batch stats ---------------------------
def fc1_stats_kernel(x_ref, w1t_ref, psum_ref, pssq_ref, *, batch, tile_b):
    i = pl.program_id(0)
    # fc1 (bias omitted: cancelled by the training-mode BN batch-mean subtraction).
    h = jnp.dot(x_ref[...], w1t_ref[...], preferred_element_type=jnp.float32)
    # Row-validity mask for the zero-padded batch tail. Both reductions run on the
    # (otherwise idle) MXU as a masked (1, TB) x (TB, Cpad) matmul instead of VPU/XLU chains.
    cols = jax.lax.broadcasted_iota(jnp.int32, (1, tile_b), 1)
    mask = ((cols + i * tile_b) < batch).astype(jnp.float32)               # (1, TB)
    psum = jnp.dot(mask, h, preferred_element_type=jnp.float32)            # (1, Cpad)
    cnt = jnp.minimum(batch - i * tile_b, tile_b).astype(jnp.float32)
    d = h - psum / cnt                                                     # tile-centered
    pssq = jnp.dot(mask, d * d, preferred_element_type=jnp.float32)        # (1, Cpad)
    psum_ref[...] = psum[None]
    pssq_ref[...] = pssq[None]


# ------------------- phase 2: recompute fc1, folded BN + ReLU, fc2 -------------------------
def fc1_bn_relu_fc2_kernel(x_ref, w1t_ref, scale_ref, shift_ref, w2t_ref, b2_ref,
                           out_ref, h_ref):
    # Recompute h once per batch tile (j == 0) and keep it in VMEM across class tiles,
    # so the (B, Cpad) intermediate never touches HBM.
    @pl.when(pl.program_id(1) == 0)
    def _():
        h = jnp.dot(x_ref[...], w1t_ref[...], preferred_element_type=jnp.float32)
        h = jnp.maximum(h * scale_ref[...] + shift_ref[...], 0.0)          # folded BN + ReLU
        h_ref[...] = h.astype(h_ref.dtype)
    out_ref[...] = (jnp.dot(h_ref[...], w2t_ref[...], preferred_element_type=jnp.float32)
                    + b2_ref[...]).astype(out_ref.dtype)


# ------------------------------------------ wrapper ----------------------------------------
def classifier_forward(x, params, *, matmul_dtype=jnp.float32, block_b=512):
    """Forward pass of Classifier. x: [B, F] f32; params in PyTorch layout ([out, in]).

    matmul_dtype=bf16 runs the fc1/fc2 MXU operands in bf16 (recommended fast path on
    v5e/v6e/v7x); BatchNorm statistics and the affine stay in f32. BatchNorm1d uses
    training-mode semantics (batch stats, biased variance, eps=1e-5); running statistics
    are not tracked. fc1's bias is dropped because the batch-mean subtraction cancels it
    (it must be re-added if eval-mode / running-stat BN is ever wanted).
    """
    B, F = x.shape
    C = params["w1"].shape[0]
    Cpad = _round_up(C, 128)
    msz = jnp.dtype(matmul_dtype).itemsize
    hsz = msz  # h scratch stored in matmul_dtype (bf16 halves the scratch on the fast path)

    vmem_limit = _vmem_limit_bytes()
    budget = (vmem_limit * 3) // 5           # headroom for compiler scratch / semaphores

    # Class (output-column) tile for fc2: keeps resident fc2 weights within VMEM at large C.
    TN = 128
    for cand in (Cpad, 2048, 1024, 512, 256, 128):
        if cand <= Cpad and Cpad % cand == 0 and 2 * Cpad * cand * msz <= budget // 3:
            TN = cand
            break
    # TODO(synk): for very large num_classes also tile fc1's class dim / fc2's K dim
    # (w1t and the h scratch are still fully Cpad-resident here).

    gran = 16 if msz < 4 else 8              # bf16 packs 2 rows per sublane

    def phase2_bytes(tb):
        return (2 * tb * F * msz             # x tile (double-buffered)
                + F * Cpad * msz             # w1t (single-buffered)
                + 2 * Cpad * 4               # scale + shift
                + 2 * Cpad * TN * msz        # w2t tile (double-buffered)
                + 2 * TN * 4                 # b2 tile
                + 2 * tb * TN * 4            # out tile (double-buffered)
                + tb * Cpad * hsz)           # h scratch

    TB = max(gran, min(int(block_b), 1024, _round_up(B, gran)))
    TB = (TB // gran) * gran
    while TB > gran and phase2_bytes(TB) > budget:
        TB = max(gran, (TB // 2 // gran) * gran)

    nb = -(-B // TB)
    nn = Cpad // TN
    Bpad = nb * TB

    # ---- glue: transpose to [in, out], zero-pad class / batch dims, cast MXU operands.
    pad_c = Cpad - C
    w1t = jnp.pad(params["w1"].T, ((0, 0), (0, pad_c))).astype(matmul_dtype)
    w2t = jnp.pad(params["w2"].T, ((0, pad_c), (0, pad_c))).astype(matmul_dtype)
    gamma = jnp.pad(params["gamma"].reshape(1, C).astype(jnp.float32), ((0, 0), (0, pad_c)))
    beta = jnp.pad(params["beta"].reshape(1, C).astype(jnp.float32), ((0, 0), (0, pad_c)))
    b2 = jnp.pad(params["b2"].reshape(1, C).astype(jnp.float32), ((0, 0), (0, pad_c)))
    x_mm = jnp.pad(x.astype(matmul_dtype), ((0, Bpad - B), (0, 0)))
    # params["b1"] is intentionally unused: cancelled by the BN batch-mean subtraction.

    # ---- phase 1: per-tile (tile-centered) fc1 batch statistics; fully parallel grid. ----
    psum_p, pssq_p = pl.pallas_call(
        functools.partial(fc1_stats_kernel, batch=B, tile_b=TB),
        out_shape=(jax.ShapeDtypeStruct((nb, 1, Cpad), jnp.float32),
                   jax.ShapeDtypeStruct((nb, 1, Cpad), jnp.float32)),
        grid=(nb,),
        in_specs=[_spec((TB, F), lambda i: (i, 0)),
                  _spec((F, Cpad), lambda i: (0, 0), single_buffered=True)],
        out_specs=(_spec((1, 1, Cpad), lambda i: (i, 0, 0)),
                   _spec((1, 1, Cpad), lambda i: (i, 0, 0))),
        compiler_params=pltpu.CompilerParams(
            dimension_semantics=("parallel",), vmem_limit_bytes=vmem_limit),
    )(x_mm, w1t)

    # ---- combine partials (Chan's parallel variance) + fold BN into scale/shift (once). ---
    psum = psum_p[:, 0, :]                                   # (nb, Cpad)
    pssq = pssq_p[:, 0, :]
    counts = jnp.asarray([min(TB, B - i * TB) for i in range(nb)],
                         jnp.float32).reshape(nb, 1)
    mean = jnp.sum(psum, axis=0, keepdims=True) / B          # (1, Cpad)
    tile_mean = psum / counts
    m2 = (jnp.sum(pssq, axis=0, keepdims=True)
          + jnp.sum(counts * (tile_mean - mean) ** 2, axis=0, keepdims=True))
    var = m2 / B                                             # biased (BN training mode)
    inv_std = jax.lax.rsqrt(var + _BN_EPS)
    scale = gamma * inv_std
    shift = beta - mean * scale

    # ---- phase 2: recompute fc1, folded BN + ReLU, fc2 -- no h1 HBM round trip. -----------
    out_padded = pl.pallas_call(
        fc1_bn_relu_fc2_kernel,
        out_shape=jax.ShapeDtypeStruct((Bpad, Cpad), jnp.float32),
        grid=(nb, nn),
        in_specs=[_spec((TB, F), lambda i, j: (i, 0)),
                  _spec((F, Cpad), lambda i, j: (0, 0), single_buffered=True),
                  _spec((1, Cpad), lambda i, j: (0, 0), single_buffered=True),
                  _spec((1, Cpad), lambda i, j: (0, 0), single_buffered=True),
                  _spec((Cpad, TN), lambda i, j: (0, j)),
                  _spec((1, TN), lambda i, j: (0, j))],
        out_specs=_spec((TB, TN), lambda i, j: (i, j)),
        scratch_shapes=[pltpu.VMEM((TB, Cpad), matmul_dtype)],
        compiler_params=pltpu.CompilerParams(
            dimension_semantics=("parallel", "arbitrary"), vmem_limit_bytes=vmem_limit),
    )(x_mm, w1t, scale, shift, w2t, b2)

    return out_padded[:B, :C]


# -------------------------------------- test harness ---------------------------------------
def init_params(key, input_num, num_classes):
    """Deterministic synthetic init (shapes match nn.Linear / nn.BatchNorm1d)."""
    k1, k2, k3, k4 = jax.random.split(key, 4)
    s1 = 1.0 / jnp.sqrt(input_num)
    s2 = 1.0 / jnp.sqrt(num_classes)
    return {
        "w1": jax.random.uniform(k1, (num_classes, input_num), jnp.float32, -s1, s1),
        "b1": jax.random.uniform(k2, (num_classes,), jnp.float32, -s1, s1),
        "gamma": jnp.ones((num_classes,), jnp.float32),   # BatchNorm1d weight
        "beta": jnp.zeros((num_classes,), jnp.float32),   # BatchNorm1d bias
        "w2": jax.random.uniform(k3, (num_classes, num_classes), jnp.float32, -s2, s2),
        "b2": jax.random.uniform(k4, (num_classes,), jnp.float32, -s2, s2),
    }


def reference_forward(x, p):
    h = x @ p["w1"].T + p["b1"]
    mean = h.mean(axis=0, keepdims=True)
    var = ((h - mean) ** 2).mean(axis=0, keepdims=True)
    h = (h - mean) / jnp.sqrt(var + _BN_EPS) * p["gamma"] + p["beta"]
    h = jnp.maximum(h, 0.0)
    return h @ p["w2"].T + p["b2"]


if __name__ == "__main__":
    B, INPUT_NUM, NUM_CLASSES = 14, 32, 16

    key = jax.random.PRNGKey(0)
    kx, kp = jax.random.split(key)
    x = jax.random.normal(kx, (B, INPUT_NUM), jnp.float32)
    params = init_params(kp, INPUT_NUM, NUM_CLASSES)
    ref = reference_forward(x, params)

    # f32 path (matches PyTorch training-mode semantics). block_b=8 forces two batch tiles
    # so the parallel partial-stat + Chan-combine path is exercised; B=14 exercises the
    # padded-row masking of the statistics.
    out = jax.block_until_ready(classifier_forward(x, params, block_b=8))
    assert out.shape == (B, NUM_CLASSES)
    assert jnp.allclose(out, ref, atol=1e-4, rtol=1e-4), "f32 mismatch vs reference"

    # bf16-MXU fast path (BN stats/affine stay f32). Looser tolerance only because the
    # matmul operands are rounded to bf16.
    out_bf16 = jax.block_until_ready(
        classifier_forward(x, params, matmul_dtype=jnp.bfloat16, block_b=8))
    assert out_bf16.shape == (B, NUM_CLASSES)
    assert jnp.allclose(out_bf16, ref, atol=1e-1, rtol=1e-1), "bf16 path diverged"

    print("KERNEL_OK")
</pallas_src>

<mosaic_0001>
module attributes {stable_mosaic.version = 11 : i64} {
  func.func @fc1_stats_kernel(%arg0: i32, %arg1: memref<8x32xf32, #tpu.memory_space<vmem>>, %arg2: memref<32x128xf32, #tpu.memory_space<vmem>>, %arg3: memref<1x1x128xf32, #tpu.memory_space<vmem>>, %arg4: memref<1x1x128xf32, #tpu.memory_space<vmem>>) attributes {dimension_semantics = [#tpu.dimension_semantics<parallel>], iteration_bounds = array<i64: 2>, scalar_prefetch = 0 : i64, scratch_operands = 0 : i64, tpu.core_type = #tpu.core_type<tc>, window_params = [{transform_indices = @transform_0, window_bounds = array<i64: 8, 32>}, {pipeline_mode = #tpu.pipeline_mode<synchronous>, transform_indices = @transform_1, window_bounds = array<i64: 32, 128>}, {transform_indices = @transform_2, window_bounds = array<i64: 1, 1, 128>}, {transform_indices = @transform_3, window_bounds = array<i64: 1, 1, 128>}]} {
    %c0 = arith.constant 0 : index
    %c0_0 = arith.constant 0 : index
    %0 = vector.load %arg1[%c0, %c0_0] : memref<8x32xf32, #tpu.memory_space<vmem>>, vector<8x32xf32>
    %c0_1 = arith.constant 0 : index
    %c0_2 = arith.constant 0 : index
    %1 = vector.load %arg2[%c0_1, %c0_2] : memref<32x128xf32, #tpu.memory_space<vmem>>, vector<32x128xf32>
    %cst = arith.constant dense<0.000000e+00> : vector<8x128xf32>
    %2 = tpu.matmul %0, %1, %cst {dimension_numbers = #tpu.dot_dimension_numbers<[1], [0], [0], [1], [0, 0, 1, 1], [], []>} : vector<8x32xf32>, vector<32x128xf32>, vector<8x128xf32> -> vector<8x128xf32>
    %3 = tpu.iota {dimensions = array<i32: 1>} : vector<1x8xi32>
    %c8_i32 = arith.constant 8 : i32
    %4 = arith.muli %arg0, %c8_i32 : i32
    %5 = vector.broadcast %4 : i32 to vector<1x8xi32>
    %6 = arith.addi %3, %5 : vector<1x8xi32>
    %c14_i32 = arith.constant 14 : i32
    %7 = vector.broadcast %c14_i32 : i32 to vector<1x8xi32>
    %8 = arith.cmpi slt, %6, %7 : vector<1x8xi32>
    %9 = arith.extui %8 : vector<1x8xi1> to vector<1x8xi32>
    %10 = arith.sitofp %9 : vector<1x8xi32> to vector<1x8xf32>
    %cst_3 = arith.constant dense<0.000000e+00> : vector<1x128xf32>
    %11 = tpu.matmul %10, %2, %cst_3 {dimension_numbers = #tpu.dot_dimension_numbers<[1], [0], [0], [1], [0, 0, 1, 1], [], []>} : vector<1x8xf32>, vector<8x128xf32>, vector<1x128xf32> -> vector<1x128xf32>
    %c8_i32_4 = arith.constant 8 : i32
    %12 = arith.muli %arg0, %c8_i32_4 : i32
    %c14_i32_5 = arith.constant 14 : i32
    %13 = arith.subi %c14_i32_5, %12 : i32
    %c8_i32_6 = arith.constant 8 : i32
    %14 = arith.minsi %13, %c8_i32_6 : i32
    %15 = arith.sitofp %14 : i32 to f32
    %16 = vector.broadcast %15 : f32 to vector<1x128xf32>
    %17 = arith.divf %11, %16 : vector<1x128xf32>
    %18 = vector.broadcast %17 : vector<1x128xf32> to vector<8x128xf32>
    %19 = arith.subf %2, %18 : vector<8x128xf32>
    %20 = arith.mulf %19, %19 : vector<8x128xf32>
    %cst_7 = arith.constant dense<0.000000e+00> : vector<1x128xf32>
    %21 = tpu.matmul %10, %20, %cst_7 {dimension_numbers = #tpu.dot_dimension_numbers<[1], [0], [0], [1], [0, 0, 1, 1], [], []>} : vector<1x8xf32>, vector<8x128xf32>, vector<1x128xf32> -> vector<1x128xf32>
    %22 = vector.shape_cast %11 : vector<1x128xf32> to vector<1x1x128xf32>
    %c0_8 = arith.constant 0 : index
    %c0_9 = arith.constant 0 : index
    %c0_10 = arith.constant 0 : index
    %23 = vector.load %arg3[%c0_8, %c0_9, %c0_10] : memref<1x1x128xf32, #tpu.memory_space<vmem>>, vector<1x1x128xf32>
    tpu.vector_store %arg3[%c0_8, %c0_9, %c0_10], %22 {strides = array<i32>} : memref<1x1x128xf32, #tpu.memory_space<vmem>>, vector<1x1x128xf32>,
    %24 = vector.shape_cast %21 : vector<1x128xf32> to vector<1x1x128xf32>
    %c0_11 = arith.constant 0 : index
    %c0_12 = arith.constant 0 : index
    %c0_13 = arith.constant 0 : index
    %25 = vector.load %arg4[%c0_11, %c0_12, %c0_13] : memref<1x1x128xf32, #tpu.memory_space<vmem>>, vector<1x1x128xf32>
    tpu.vector_store %arg4[%c0_11, %c0_12, %c0_13], %24 {strides = array<i32>} : memref<1x1x128xf32, #tpu.memory_space<vmem>>, vector<1x1x128xf32>,
    return
  }
  func.func @transform_0(%arg0: i32) -> (i32, i32) {
    %c0_i32 = arith.constant 0 : i32
    %c0_i32_0 = arith.constant 0 : i32
    return %arg0, %c0_i32 : i32, i32
  }
  func.func @transform_1(%arg0: i32) -> (i32, i32) {
    %c0_i32 = arith.constant 0 : i32
    %c0_i32_0 = arith.constant 0 : i32
    %c0_i32_1 = arith.constant 0 : i32
    return %c0_i32, %c0_i32_0 : i32, i32
  }
  func.func @transform_2(%arg0: i32) -> (i32, i32, i32) {
    %c0_i32 = arith.constant 0 : i32
    %c0_i32_0 = arith.constant 0 : i32
    %c0_i32_1 = arith.constant 0 : i32
    return %arg0, %c0_i32, %c0_i32_0 : i32, i32, i32
  }
  func.func @transform_3(%arg0: i32) -> (i32, i32, i32) {
    %c0_i32 = arith.constant 0 : i32
    %c0_i32_0 = arith.constant 0 : i32
    %c0_i32_1 = arith.constant 0 : i32
    return %arg0, %c0_i32, %c0_i32_0 : i32, i32, i32
  }
}

</mosaic_0001>

<bundles_post_ra>
// kernel: tpu_custom_call.1
= control target key start
LH: loop header
LB: loop body
LE: loop exit
PB: predicated region body
PF: predicated region fallthrough
CT: control target
= control target key end

     0   :  { %9 = vsyncpa [#allocation3], 0  ;;  %s1134_s0 = inlined_call_operand.hbm [shape: f32[16,32], index: 0, kind: input, shape index: {}]   ;;  %s1135_s1 = inlined_call_operand.hbm [shape: f32[32,128], index: 1, kind: input, shape index: {}]   ;;  %s1136_s2 = inlined_call_operand.hbm [shape: f32[2,1,128], index: 2, kind: output, shape index: {0}]   ;;  %s1137_s3 = inlined_call_operand.hbm [shape: f32[2,1,128], index: 3, kind: output, shape index: {1}]  }
   0x1   :  { %11 = vsyncpa [#allocation3 + $0x1], 0 }
   0x2   :  { %12 = vsyncpa [#allocation6], 0 }
   0x3   :  { %13 = vsyncpa [#allocation4], 0 }
   0x4   :  { %15 = vsyncpa [#allocation4 + $0x1], 0 }
   0x5   :  { %16 = vsyncpa [#allocation9], 0 }
   0x6   :  { %18 = vsyncpa [#allocation9 + $0x1], 0  ;;  %s904_s12 = smov 0   ;;  %s906_s13 = smov 0  }
   0x7   :  { %s908_s14 = smov 0   ;;  %s910_s15 = smov 0  }
   0x8 LB: > { %s925_s16 = sadd.s32 4294967295, %s873_s15   ;;  %s590_s17 = sadd.s32 4294967294, %s873_s15   ;;  %s873_s15 = sphi %s910_s15, %s1157_s15   ;;  %s869_s14 = sphi %s908_s14, %s1156_s14   ;;  %s865_s13 = sphi %s906_s13, %s1155_s13   ;;  %s861_s12 = sphi %s904_s12, %s1154_s12  }
   0x9   : > { %p44_p0 = scmp.ne.s32.totalorder %s865_s13, %s861_s12  ;;  %p1138_p1 = scmp.eq.s32.totalorder %s925_s16, 0 }
   0xa   : > { %p95_p3 = scmp.eq.s32.totalorder %s590_s17, 1  ;;  %p591_p5 = scmp.ge.s32.totalorder %s873_s15, 1 }
   0xb   : > { %p934_p4 = por %p1138_p1, %p44_p0  ;;  %p128_p7 = scmp.lt.s32.totalorder %s873_s15, 3 }
   0xc   : > { %p939_p6 = por %p95_p3, %p44_p0  ;;  %s875_s21 = smov [#allocation5]  }
   0xd   : > { %s1141_s18 = scalar_select %p934_p4, 1, 0 }
   0xe   : > { %s1142_s19 = scalar_select %p939_p6, 1, 0 }
   0xf   : > { %p944_p8 = pnand %p591_p5, %p128_p7  ;;  %s140_s22 = sshll.u32 %s875_s21, 4  ;;  %s948_s22 = int_to_ptr.vmem [resolvable:$true] %s140_s22 }
  0x10   : > { %s960_s24 = sadd.s32 1, %s873_s15   ;;  %s31_s25 = sadd.s32 1, %s869_s14 }
  0x11   : > { %s1143_s20 = scalar_select %p944_p8, 1, 0 }
  0x12   : > { %p654_p9 = pneg %p944_p8  ;;  %s28_s26 = ssub.s32 %s873_s15, %s960_s24 }
  0x13   : > { %s713_s29 = scalar_lea.hbm %s1135_s1, 512 }
  0x14   : > { %p955_p11 = pnand %p654_p9, %p1138_p1  ;;  %p714_p12 = scmp.ne.s32.totalorder %s1135_s1, %s713_s29 }
  0x15   : > { %p720_p5 = scmp.lt.u32.totalorder %s713_s29, %s1135_s1 }
  0x16   : > { %p715_p13 = pneg %p955_p11 }
  0x18   : > { %p716_p0 = pnand %p715_p13, %p714_p12 }
  0x1a   : > { %p717_p3 = pneg %p716_p0 }
  0x1c   : > { %p722_p7 = pnand %p720_p5, %p717_p3 }
  0x1e   : > { %725 = shalt.err (!%p722_p7)
}
  0x1f   : > { %s726_s7 = scalar_lea.vmem %s948_s22, 512  ;;  %p734_p2 = scmp.lt.s32.totalorder %s948_s22, %s948_s22 }
  0x20   : > { %p727_p9 = scmp.ne.s32.totalorder %s948_s22, %s726_s7  ;;  %p735_p6 = scmp.lt.s32.totalorder %s726_s7, %s726_s7 }
  0x22   : > { %p729_p10 = pnand %p727_p9, %p715_p13  ;;  %p736_p4 = por %p735_p6, %p734_p2 }
  0x24   : > { %p730_p1 = pneg %p729_p10 }
  0x26   : > { %p737_p8 = pnand %p736_p4, %p730_p1 }
  0x28   : > { %740 = shalt.err (!%p737_p8)
}
  0x29   : > { %s876_s8 = smov 128   ;;  %s877_s9 = smov 8  }
  0x2a   : > { %657 = dma.hbm_to_vmem [thread:$0]  (!%p955_p11), %s1135_s1, 512, %s948_s22, [#allocation6], %s876_s8, %s876_s8, %s877_s9  }
  0x2b   : > { %p29_p2 = scmp.eq.s32.totalorder %s28_s26, 0  ;;  %p38_p1 = scmp.ne.s32.totalorder %s869_s14, %s865_s13 }
  0x2c   : > { %p39_p4 = scmp.eq.s32.totalorder %s873_s15, 0  ;;  %p670_p6 = scmp.lt.s32.totalorder %s873_s15, 2 }
  0x2d   : > { %s991_s17 = scalar_select %p29_p2, %s869_s14, %s31_s25  }
  0x2e   : > { %p40_p8 = por %p39_p4, %p38_p1  ;;  %p1145_p10 = scmp.eq.s32.totalorder %s925_s16, 1 }
  0x2f   : > { %s154_s27 = sand.u32 1, %s869_s14   ;;  %s595_s28 = sshll.u32 %s873_s15, 7 }
  0x30   : > { %p995_p12 = por %p1145_p10, %p38_p1  ;;  %s594_s29 = sshll.u32 %s154_s27, 3 }
  0x31   : > { %s1004_s4 = scalar_lea.hbm %s1134_s0, %s595_s28  ;;  %s158_s22 = scalar_lea.vmem [#allocation2], %s594_s29 }
  0x32   : > { %s165_s25 = sshll.u32 %s158_s22, 4  ;;  %p1006_p11 = pnand %p670_p6, %p40_p8  ;;  %s1010_s25 = int_to_ptr.vmem [resolvable:$true] %s165_s25 }
  0x33   : > { %s155_s5 = scalar_lea.sflag [#allocation3], %s154_s27  ;;  %s741_s6 = scalar_lea.hbm %s1004_s4, 128 }
  0x34   : > { %p742_p13 = scmp.ne.s32.totalorder %s1004_s4, %s741_s6  ;;  %p743_p0 = pneg %p1006_p11 }
  0x35   : > { %s746_s9 = scalar_lea.hbm %s1134_s0, 256  ;;  %p747_p7 = scmp.lt.u32.totalorder %s1004_s4, %s1134_s0 }
  0x36   : > { %p744_p3 = pnand %p743_p0, %p742_p13  ;;  %p748_p9 = scmp.lt.u32.totalorder %s746_s9, %s741_s6 }
  0x37   : > { %p750_p1 = scmp.lt.u32.totalorder %s741_s6, %s1004_s4 }
  0x38   : > { %p745_p5 = pneg %p744_p3  ;;  %p749_p2 = por %p748_p9, %p747_p7 }
  0x3a   : > { %p751_p4 = por %p750_p1, %p749_p2 }
  0x3c   : > { %p752_p6 = pnand %p751_p4, %p745_p5 }
  0x3e   : > { %755 = shalt.err (!%p752_p6)
}
  0x3f   : > { %s756_s27 = scalar_lea.vmem %s1010_s25, 128  ;;  %s878_s28 = smov [#allocation2]  }
  0x40   : > { %p757_p8 = scmp.ne.s32.totalorder %s1010_s25, %s756_s27  ;;  %s761_s29 = sshll.u32 %s878_s28, 4  ;;  %s762_s29 = int_to_ptr.vmem [resolvable:$false] %s761_s29 }
  0x41   : > { %s763_s23 = scalar_lea.vmem %s762_s29, 256  ;;  %p764_p3 = scmp.lt.s32.totalorder %s1010_s25, %s762_s29 }
  0x42   : > { %p759_p10 = pnand %p757_p8, %p743_p0  ;;  %p765_p7 = scmp.lt.s32.totalorder %s763_s23, %s756_s27 }
  0x44   : > { %p760_p13 = pneg %p759_p10  ;;  %p766_p9 = por %p765_p7, %p764_p3 }
  0x46   : > { %p767_p2 = pnand %p766_p9, %p760_p13 }
  0x48   : > { %770 = shalt.err (!%p767_p2)
}
  0x49   : > { %661 = dma.hbm_to_vmem [thread:$0]  (!%p1006_p11), %s1004_s4, 128, %s1010_s25, %s155_s5  }
  0x4a   : > { %p1148_p5 = scmp.ne.s32.totalorder %s1143_s20, 0 }
  0x4b   : > { %s1040_s30 = sand.u32 (!%p1148_p5), 1, %s865_s13   ;;  %p1149_p0 = scmp.ne.s32.totalorder (!%p1148_p5), %s1141_s18, 0 }
  0x4c   : > { %174 = sbr.rel (%p1148_p5) target bundleno = 757 (0x2f5), region = 28  ;;  %s597_s22 = sshll.u32 (!%p1148_p5), %s1040_s30, 3 }
  0x4d   : > { %s177_s6 = scalar_lea.sflag (!%p1148_p5), [#allocation3], %s1040_s30  ;;  %s180_s7 = scalar_lea.vmem (!%p1148_p5), [#allocation2], %s597_s22 }
  0x53   : > { %844 = dma.done.wait (%p1149_p0), %s177_s6, 128  }
  0x54   : > { %846 = vsyncadd (%p1149_p0), %s177_s6, 4294967168  ;;  %p1150_p1 = scmp.eq.s32.totalorder %s925_s16, 0 }
  0x56   : > { %848 = dma.done.wait (%p1150_p1), [#allocation6], 512   ;;  %p1151_p11 = pmov %p1150_p1 }
  0x57   : > { %v879_v0 = vmov 0.0|0.0   ;;  %vm880_vm0 = vmmov 0   ;;  %v881_v1 = vmov 0.0   ;;  %v211_v2 = vld [vmem:[#allocation5] sm:$0xff]  ;;  %v212_v3 = vld [vmem:[#allocation5 + $0x8] sm:$0xff]  ;;  %v213_v4 = vld [vmem:[#allocation5 + $0x10] sm:$0xff]  ;;  %v289_v9 = vlaneseq }
  0x58   : > { %850 = vsyncadd (%p1151_p11), [#allocation6], 4294966784  ;;  %638 = vmatprep.subr.bf16.mxu0 %v879_v0  ;;  %625 = vmatprep.mubr.msk.f32.mxu0 %vm880_vm0, %v881_v1  ;;  %v639_v5 = vpack.c.bf16 %v212_v3, %v211_v2  ;;  %v214_v6 = vld [vmem:[#allocation5 + $0x18] sm:$0xff]  ;;  %vm215_vm1 = vcmask 261120   ;;  %s600_s18 = sshll.u32 %s925_s16, 3  ;;  %vm297_vm3 = vcmask 64512  }
  0x59   : > { %628 = vmatprep.subr.mxu1 %v881_v1  ;;  %630 = vmatprep.mubr.msk.f32.mxu1 %vm880_vm0, %v881_v1  ;;  %v642_v7 = vpack.c.bf16 %v214_v6, %v213_v4  ;;  %v210_v8 = vld [vmem:[%s180_s7] sm:$0xff]  ;;  %v290_v10 = vand.u32 127, %v289_v9  ;;  %v292_v11 = vstv %s600_s18  ;;  %s371_s20 = ssub.s32 14, %s600_s18  ;;  %v379_v17 = vshrl.u32 %v289_v9, 7  ;;  %s203_s25 = scalar_lea.vmem [#allocation7], %s1040_s30 }
  0x5a   : > { %640 = vmatpush3.bf16.msra.mxu0 %v639_v5  ;;  %p372_p4 = scmp.lt.s32.totalorder %s371_s20, 8  ;;  %s473_s26 = sshll.u32 %s203_s25, 4  ;;  %s1059_s26 = int_to_ptr.vmem [resolvable:$true] %s473_s26 }
  0x5b   : > { %641 = vmatprep.subr.bf16.mxu0 %v879_v0  ;;  %v293_v12 = vadd.s32 %v292_v11, %v290_v10  ;;  %v380_v19 = vsub.s32 0, %v379_v17  ;;  %s604_s5 = sshll.u32 %s925_s16, 4  ;;  %s457_s11 = scalar_lea.sflag [#allocation4], %s1040_s30 }
  0x5c   : > { %s1159_s20 = smov (!%p372_p4, %s371_s20), 8  ;;  %s471_s10 = scalar_lea.hbm %s1136_s2, %s604_s5 }
  0x5d   : > { %vm294_vm2 = vcmp.lt.s32.totalorder %v293_v12, 14  ;;  %s374_s4 = scvt.s32.f32 %s1159_s20  ;;  %s771_s27 = scalar_lea.vmem %s1059_s26, 16 }
  0x5e   : > { %643 = vmatpush3.bf16.msra.mxu0 %v642_v7  ;;  %v601_v13 = vsel %vm294_vm2, 1.0, %v881_v1  ;;  %p772_p6 = scmp.ne.s32.totalorder %s1059_s26, %s771_s27  ;;  %s882_s28 = smov [#allocation7]  }
  0x5f   : > { %v375_v16 = vstv %s374_s4  ;;  %s775_s29 = sshll.u32 %s882_s28, 4  ;;  %s776_s29 = int_to_ptr.vmem [resolvable:$false] %s775_s29 }
  0x60   : > { %711 = vrcp.f32 %v375_v16  ;;  %p773_p8 = pnand %p772_p6, %p995_p12  ;;  %s777_s23 = scalar_lea.vmem %s776_s29, 32 }
  0x61   : > { %626 = vmatmul.mubr.msk.f32.vlgmr.msra.gmra.mrb[0].mxu0 %vm215_vm1, %v210_v8  ;;  %p778_p13 = scmp.lt.s32.totalorder %s1059_s26, %s776_s29  ;;  %p779_p3 = scmp.lt.s32.totalorder %s777_s23, %s771_s27 }
  0x62   : > { %p774_p10 = pneg %p773_p8 }
  0x63   : > { %p780_p7 = por %p779_p3, %p778_p13 }
  0x65   : > { %p781_p9 = pnand %p780_p7, %p774_p10 }
  0x6a   : > { %v712_v18 = vpop.eup %711 }
 0x134   : > { %v285_v14 = vpop.f32.mrb[0].mxu0 }
 0x135   : > { %v627_v15 = vpop.f32.mrb[1].mxu0  ;;  %629 = vmatpush3.msra.mxu1 %v285_v14 }
 0x136   : > { %631 = vmatmul.mubr.msk.f32.vlgmr.msra.gmra.mrb[0].mxu1 %vm297_vm3, %v601_v13  ;;  %633 = vmatprep.subr.mxu1 %v881_v1 }
 0x137   : > { %635 = vmatprep.mubr.msk.f32.mxu1 %vm880_vm0, %v881_v1 }
 0x209   : > { %v367_v20 = vpop.f32.mrb[0].mxu1 }
 0x20a   : > { %v377_v21 = vmul.f32 %v712_v18, %v367_v20  ;;  %454 = vst [vmem:[%s203_s25] sm:$0x1] %v367_v20  ;;  %v632_v22 = vpop.f32.mrb[1].mxu1 }
 0x20c   : > { %v381_v23 = vrot.slane %v377_v21, %v380_v19 }
 0x20e   : > { %v382_v24 = vsub.f32 %v285_v14, %v381_v23 }
 0x210   : > { %v383_v25 = vmul.f32 %v382_v24, %v382_v24 }
 0x212   : > { %634 = vmatpush3.msra.mxu1 %v383_v25 }
 0x213   : > { %636 = vmatmul.mubr.msk.f32.vlgmr.msra.gmra.mrb[2].mxu1 %vm297_vm3, %v601_v13 }
 0x214   : > { %784 = shalt.err (!%p781_p9)
}
 0x215   : > { %s785_s22 = scalar_lea.hbm %s471_s10, 16  ;;  %s789_s18 = scalar_lea.hbm %s1136_s2, 32 }
 0x216   : > { %p786_p2 = scmp.ne.s32.totalorder %s471_s10, %s785_s22  ;;  %p790_p1 = scmp.lt.u32.totalorder %s471_s10, %s1136_s2 }
 0x217   : > { %p791_p11 = scmp.lt.u32.totalorder %s789_s18, %s785_s22  ;;  %p793_p6 = scmp.lt.u32.totalorder %s785_s22, %s471_s10 }
 0x218   : > { %p787_p5 = pnand %p786_p2, %p995_p12 }
 0x219   : > { %p792_p4 = por %p791_p11, %p790_p1 }
 0x21a   : > { %p788_p0 = pneg %p787_p5 }
 0x21b   : > { %p794_p8 = por %p793_p6, %p792_p4 }
 0x21d   : > { %p795_p10 = pnand %p794_p8, %p788_p0 }
 0x21f   : > { %798 = shalt.err (!%p795_p10)
}
 0x220   : > { %650 = dma.vmem_to_hbm [thread:$0]  (%p995_p12), %s1059_s26, 16, %s471_s10, %s457_s11  }
 0x221   : > { %s209_s25 = scalar_lea.vmem [#allocation8], %s1040_s30  ;;  %s1092_s28 = scalar_lea.hbm %s1137_s3, %s604_s5 }
 0x222   : > { %s486_s8 = sshll.u32 %s209_s25, 4  ;;  %s461_s29 = scalar_lea.sflag [#allocation9], %s1040_s30  ;;  %s1085_s8 = int_to_ptr.vmem [resolvable:$true] %s486_s8 }
 0x223   : > { %s799_s23 = scalar_lea.vmem %s1085_s8, 16  ;;  %s883_s26 = smov [#allocation8]  }
 0x224   : > { %p800_p13 = scmp.ne.s32.totalorder %s1085_s8, %s799_s23  ;;  %s803_s10 = sshll.u32 %s883_s26, 4  ;;  %s804_s10 = int_to_ptr.vmem [resolvable:$false] %s803_s10 }
 0x225   : > { %s805_s16 = scalar_lea.vmem %s804_s10, 32  ;;  %p806_p9 = scmp.lt.s32.totalorder %s1085_s8, %s804_s10 }
 0x226   : > { %p801_p3 = pnand %p800_p13, %p995_p12  ;;  %p807_p2 = scmp.lt.s32.totalorder %s805_s16, %s799_s23 }
 0x228   : > { %p802_p7 = pneg %p801_p3  ;;  %p808_p5 = por %p807_p2, %p806_p9 }
 0x22a   : > { %p809_p0 = pnand %p808_p5, %p802_p7 }
 0x2e6   : > { %v450_v26 = vpop.f32.mrb[2].mxu1 }
 0x2e7   : > { %455 = vst [vmem:[%s209_s25] sm:$0x1] %v450_v26  ;;  %v637_v27 = vpop.f32.mrb[3].mxu1 }
 0x2e8   : > { %812 = shalt.err (!%p809_p0)
}
 0x2e9   : > { %s813_s30 = scalar_lea.hbm %s1092_s28, 16  ;;  %s817_s22 = scalar_lea.hbm %s1137_s3, 32 }
 0x2ea   : > { %p814_p1 = scmp.ne.s32.totalorder %s1092_s28, %s813_s30  ;;  %p818_p6 = scmp.lt.u32.totalorder %s1092_s28, %s1137_s3 }
 0x2eb   : > { %p819_p8 = scmp.lt.u32.totalorder %s817_s22, %s813_s30  ;;  %p821_p13 = scmp.lt.u32.totalorder %s813_s30, %s1092_s28 }
 0x2ec   : > { %p815_p11 = pnand %p814_p1, %p995_p12 }
 0x2ed   : > { %p820_p10 = por %p819_p8, %p818_p6 }
 0x2ee   : > { %p816_p4 = pneg %p815_p11 }
 0x2ef   : > { %p822_p3 = por %p821_p13, %p820_p10 }
 0x2f1   : > { %p823_p7 = pnand %p822_p3, %p816_p4 }
 0x2f3   : > { %826 = shalt.err (!%p823_p7)
}
 0x2f4   : > { %651 = dma.vmem_to_hbm [thread:$0]  (%p995_p12), %s1085_s8, 16, %s1092_s28, %s461_s29  }
 0x2f5 PF: > { %s498_s18 = sand.u32 1, %s861_s12   ;;  %p1152_p9 = scmp.ne.s32.totalorder %s1142_s19, 0 }
 0x2f6   : > { %p1153_p2 = scmp.ge.s32.totalorder %s873_s15, 2  ;;  %s499_s20 = scalar_lea.sflag [#allocation4], %s498_s18 }
 0x2f8   : > { %p663_p5 = pnand %p1153_p2, %p1152_p9 }
 0x2fa   : > { %852 = dma.done.wait (!%p663_p5), %s499_s20, 16  }
 0x2fb   : > { %854 = vsyncadd (!%p663_p5), %s499_s20, 4294967280  ;;  %s507_s4 = scalar_lea.sflag [#allocation9], %s498_s18 }
 0x2fc   : > { %856 = dma.done.wait (!%p663_p5), %s507_s4, 16  }
 0x2fd   : > { %858 = vsyncadd (!%p663_p5), %s507_s4, 4294967280  ;;  %p21_p12 = scmp.ge.s32.totalorder %s960_s24, 4   ;;  %s1154_s12 = smov %s865_s13 }
 0x2fe   : > { %s1155_s13 = smov %s869_s14  ;;  %s1156_s14 = smov %s991_s17 }
 0x2ff   : > { %s1157_s15 = smov %s960_s24  ;;  %23 = sbr.rel (!%p21_p12) target bundleno = 8 (0x8), region = 94 }
 0x306   :  { %511 = vsyncpa [#allocation3], 1 }
 0x307   :  { %513 = vsyncpa [#allocation3 + $0x1], 1 }
 0x308   :  { %514 = vsyncpa [#allocation6], 1 }
 0x309   :  { %515 = vsyncpa [#allocation4], 1 }
 0x30a   :  { %517 = vsyncpa [#allocation4 + $0x1], 1 }
 0x30b   :  { %518 = vsyncpa [#allocation9], 1 }
 0x30c   :  { %520 = vsyncpa [#allocation9 + $0x1], 1 }

</bundles_post_ra>
